<compile_context>
chip_gen: v5e
topology: v5e:2x2
jax: 0.10.0
libtpu: 0.0.40
codegen_flags: <defaults>
</compile_context>

<pallas_src>
import math
from functools import partial

import jax
import jax.numpy as jnp
from jax.experimental import pallas as pl
from jax.experimental.pallas import tpu as pltpu

# Finite mask sentinel: safe because causal masking guarantees every Q row has at least
# one unmasked column (kv block 0 is always computed).  Do NOT reuse with padding masks
# that can fully mask a row.
_MASK_VALUE = -0.7 * float(jnp.finfo(jnp.float32).max)
_VMEM_LIMIT = 32 * 1024 * 1024  # below v7x 64 MiB physical, above v5e 16 MiB scoped default


def _pick_tile(dim, target, align):
    """Largest tile <= target that divides `dim` and is `align`-aligned, else full dim."""
    if dim <= target:
        return dim
    t = (target // align) * align
    while t >= align:
        if dim % t == 0:
            return t
        t -= align
    return dim


# ----------------------------------------------------------------------------- #
# Tiled linear: y = x @ w + b
# ----------------------------------------------------------------------------- #
def _linear_kernel_acc(x_ref, w_ref, b_ref, o_ref, acc_ref):
    k = pl.program_id(2)

    @pl.when(k == 0)
    def _init():
        acc_ref[...] = jnp.zeros_like(acc_ref)

    acc_ref[...] += jnp.dot(
        x_ref[...], w_ref[...], preferred_element_type=jnp.float32
    )

    @pl.when(k == pl.num_programs(2) - 1)
    def _finalize():  # bias added once, in the epilogue
        o_ref[...] = (acc_ref[...] + b_ref[...]).astype(o_ref.dtype)


def _linear_kernel_single(x_ref, w_ref, b_ref, o_ref):
    # K fits a single block: no accumulator scratch round-trip needed.
    o_ref[...] = (
        jnp.dot(x_ref[...], w_ref[...], preferred_element_type=jnp.float32)
        + b_ref[...]
    ).astype(o_ref.dtype)


def pallas_linear(x2d, w, b, *, out_dtype=jnp.float32, tm=512, tn=1024, tk=1024):
    """y = x2d @ w + b with bf16 MXU inputs, f32 accumulation, selectable output dtype."""
    M, K = x2d.shape
    Kw, Nout = w.shape
    assert K == Kw
    tm = _pick_tile(M, tm, 8)
    tn = _pick_tile(Nout, tn, 128)
    tk = _pick_tile(K, tk, 128)
    nk = K // tk

    x_bf = x2d.astype(jnp.bfloat16)
    w_bf = w.astype(jnp.bfloat16)
    b2d = b.reshape(1, Nout).astype(jnp.float32)

    out_bytes = M * Nout * jnp.dtype(out_dtype).itemsize
    cost = pl.CostEstimate(
        flops=int(2 * M * K * Nout),
        transcendentals=0,
        bytes_accessed=int(M * K * 2 + K * Nout * 2 + out_bytes + Nout * 4),
    )

    if nk == 1:  # K collapsed into one block: fast path, 2-D parallel grid
        return pl.pallas_call(
            _linear_kernel_single,
            out_shape=jax.ShapeDtypeStruct((M, Nout), out_dtype),
            grid=(M // tm, Nout // tn),
            in_specs=[
                pl.BlockSpec((tm, K), lambda i, j: (i, 0)),
                pl.BlockSpec((K, tn), lambda i, j: (0, j)),
                pl.BlockSpec((1, tn), lambda i, j: (0, j)),
            ],
            out_specs=pl.BlockSpec((tm, tn), lambda i, j: (i, j)),
            compiler_params=pltpu.CompilerParams(
                dimension_semantics=("parallel", "parallel"),
                vmem_limit_bytes=_VMEM_LIMIT,
            ),
            cost_estimate=cost,
        )(x_bf, w_bf, b2d)

    return pl.pallas_call(
        _linear_kernel_acc,
        out_shape=jax.ShapeDtypeStruct((M, Nout), out_dtype),
        grid=(M // tm, Nout // tn, nk),
        in_specs=[
            pl.BlockSpec((tm, tk), lambda i, j, k: (i, k)),
            pl.BlockSpec((tk, tn), lambda i, j, k: (k, j)),  # weight-stationary in M
            pl.BlockSpec((1, tn), lambda i, j, k: (0, j)),
        ],
        out_specs=pl.BlockSpec((tm, tn), lambda i, j, k: (i, j)),
        scratch_shapes=[pltpu.VMEM((tm, tn), jnp.float32)],
        compiler_params=pltpu.CompilerParams(
            dimension_semantics=("parallel", "parallel", "arbitrary"),
            vmem_limit_bytes=_VMEM_LIMIT,
        ),
        cost_estimate=cost,
    )(x_bf, w_bf, b2d)


# ----------------------------------------------------------------------------- #
# Flash-style causal attention over head groups
# ----------------------------------------------------------------------------- #
def _flash_attn_kernel(q_ref, k_ref, v_ref, o_ref, *scratch,
                       scale, G, hd, tq, tk):
    """One (batch, head-group, q-tile, kv-tile) step.

    Blocks carry G heads packed along the lane axis (G*hd lanes, >=128 when possible).
    Per-head online-softmax state lives in dedicated VMEM scratch buffers.
    """
    m_refs = scratch[:G]
    l_refs = scratch[G:2 * G]
    acc_refs = scratch[2 * G:3 * G]
    qs_ref = scratch[3 * G]          # pre-scaled Q, bf16, resident across the kv axis

    qi = pl.program_id(2)
    ki = pl.program_id(3)

    @pl.when(ki == 0)
    def _init():
        # Fold the softmax scale into Q once per Q tile instead of a (tq, tk)
        # multiply every kv step.
        qs_ref[...] = (q_ref[0].astype(jnp.float32) * scale).astype(jnp.bfloat16)
        for h in range(G):
            m_refs[h][...] = jnp.full_like(m_refs[h], -jnp.inf)
            l_refs[h][...] = jnp.zeros_like(l_refs[h])
            acc_refs[h][...] = jnp.zeros_like(acc_refs[h])

    q_first = qi * tq
    k_first = ki * tk
    has_work = k_first <= q_first + (tq - 1)            # block not fully above diagonal
    interior = k_first + (tk - 1) <= q_first             # block fully below diagonal

    def _attend(use_mask):
        q = qs_ref[...]                                   # (tq, G*hd) bf16, pre-scaled
        k = k_ref[0]                                      # (tk, G*hd) bf16
        v = v_ref[0]                                      # (tk, G*hd) bf16
        if use_mask:
            # Single static (col - row) iota compared against one scalar.
            col_minus_row = (
                jax.lax.broadcasted_iota(jnp.int32, (tq, tk), 1)
                - jax.lax.broadcasted_iota(jnp.int32, (tq, tk), 0)
            )
            keep = col_minus_row <= (q_first - k_first)
        for h in range(G):
            sl = slice(h * hd, (h + 1) * hd)
            s = jax.lax.dot_general(
                q[:, sl], k[:, sl], (((1,), (1,)), ((), ())),
                preferred_element_type=jnp.float32)        # (tq, tk) f32
            if use_mask:
                s = jnp.where(keep, s, _MASK_VALUE)
            m_prev = m_refs[h][...]
            m_new = jnp.maximum(m_prev, jnp.max(s, axis=-1, keepdims=True))
            alpha = jnp.exp(m_prev - m_new)
            p = jnp.exp(s - m_new)
            l_refs[h][...] = alpha * l_refs[h][...] + jnp.sum(p, axis=-1, keepdims=True)
            acc_refs[h][...] = alpha * acc_refs[h][...] + jax.lax.dot_general(
                p.astype(v.dtype), v[:, sl], (((1,), (0,)), ((), ())),
                preferred_element_type=jnp.float32)
            m_refs[h][...] = m_new

    @pl.when(has_work & jnp.logical_not(interior))
    def _diagonal():          # straddles the diagonal -> needs masking
        _attend(use_mask=True)

    @pl.when(interior)
    def _unmasked():          # fully lower-triangular -> no mask VALU work
        _attend(use_mask=False)

    @pl.when(ki == pl.num_programs(3) - 1)
    def _finalize():          # normalize once per Q tile (EUP vrcp), one dense store
        outs = []
        for h in range(G):
            inv_l = pl.reciprocal(l_refs[h][...], approx=True)
            outs.append(acc_refs[h][...] * inv_l)
        o_ref[0] = jnp.concatenate(outs, axis=-1).astype(o_ref.dtype)


def pallas_causal_attention(qkv, *, D, num_heads, scale, tq=128, tk=128,
                            out_dtype=jnp.bfloat16):
    """Causal SDPA taking the fused qkv buffer.

    qkv: (B, N, 3D) with columns [q | k | v]; within each section column = h*hd + d
         (exactly the layout the qkv Linear produces).
    Returns (B, N, D) with heads packed head-major along the last axis, i.e. already
    in the torch `x.transpose(1, 2).reshape(B, N, -1)` layout.
    """
    B, N, threeD = qkv.shape
    assert threeD == 3 * D and D % num_heads == 0
    H = num_heads
    hd = D // H
    tq = _pick_tile(N, tq, 8)   # TODO(synk): sweep tq=256 on v6e/v7x once bundle dumps
    tk = _pick_tile(N, tk, 8)   #             confirm the (tq, tk) f32 tile doesn't spill.
    nq, nk = N // tq, N // tk

    # Head grouping: pack G heads per block so blocks are >=128 lanes when possible.
    if hd % 128 == 0:
        G = 1
    elif 128 % hd == 0 and H % (128 // hd) == 0:
        G = 128 // hd
    else:
        G = H
    lanes = G * hd
    HG = H // G

    fused = (lanes % 128 == 0)
    if fused:
        # Feed the fused qkv buffer directly; q/k/v sections differ only by a column
        # block offset, so no XLA head-split transpose or slice is needed.
        q_in = k_in = v_in = qkv
        q_off, k_off, v_off = 0, HG, 2 * HG
    else:
        # TODO(synk): small-D fallback (D < 128): a 128-lane-multiple column block is
        # impossible, so slice q/k/v in XLA (tiny copies at these shapes).
        q_in = qkv[:, :, :D]
        k_in = qkv[:, :, D:2 * D]
        v_in = qkv[:, :, 2 * D:]
        q_off = k_off = v_off = 0

    def q_map(b, g, qi, ki):
        return (b, qi, q_off + g)

    def k_map(b, g, qi, ki):
        # Clamp skipped (fully masked) kv blocks to the last needed one so the pipeline
        # re-uses the resident K/V tile instead of issuing a wasted DMA.
        return (b, jnp.minimum(ki, (qi * tq + tq - 1) // tk), k_off + g)

    def v_map(b, g, qi, ki):
        return (b, jnp.minimum(ki, (qi * tq + tq - 1) // tk), v_off + g)

    kernel = partial(_flash_attn_kernel, scale=scale, G=G, hd=hd, tq=tq, tk=tk)

    scratch = (
        [pltpu.VMEM((tq, 1), jnp.float32)] * G      # running max m, per head
        + [pltpu.VMEM((tq, 1), jnp.float32)] * G    # running denom l, per head
        + [pltpu.VMEM((tq, hd), jnp.float32)] * G   # output accumulator, per head
        + [pltpu.VMEM((tq, lanes), jnp.bfloat16)]   # pre-scaled Q tile
    )

    # Advisory only: K/V are re-streamed once per Q tile (causal ~halves it).
    kv_restream = max(1, (nk + 1) // 2)
    cost = pl.CostEstimate(
        flops=int(2 * B * H * N * N * hd),          # ~4*N^2*hd per head, ~halved by causal skip
        transcendentals=int(B * H * N * N // 2),
        bytes_accessed=int(B * N * D * 2            # Q (bf16, resident per tile)
                           + 2 * B * N * D * 2 * kv_restream   # K+V bf16 restreams
                           + B * N * D * 2),        # output bf16
    )

    # TODO(synk): for long N, replace the dense (B, HG, nq, nk) grid with a
    # scalar-prefetched flattened lower-triangular grid so skipped blocks never
    # become grid iterations.
    out = pl.pallas_call(
        kernel,
        out_shape=jax.ShapeDtypeStruct((B, N, D), out_dtype),
        grid=(B, HG, nq, nk),
        in_specs=[
            pl.BlockSpec((1, tq, lanes), q_map),
            pl.BlockSpec((1, tk, lanes), k_map),
            pl.BlockSpec((1, tk, lanes), v_map),
        ],
        out_specs=pl.BlockSpec((1, tq, lanes), lambda b, g, qi, ki: (b, qi, g)),
        scratch_shapes=scratch,
        compiler_params=pltpu.CompilerParams(
            dimension_semantics=("parallel", "parallel", "parallel", "arbitrary"),
            vmem_limit_bytes=_VMEM_LIMIT,
        ),
        cost_estimate=cost,
    )(q_in, k_in, v_in)
    return out


# ----------------------------------------------------------------------------- #
# Module glue (parameter handling, branch selection)
# ----------------------------------------------------------------------------- #
def adaptive_avg_pool1d(x, out_size):
    """F.adaptive_avg_pool1d over the last axis of x."""
    L = x.shape[-1]
    o = jnp.arange(out_size)
    starts = (o * L) // out_size
    ends = -((-(o + 1) * L) // out_size)  # ceil((i+1)*L/out)
    idx = jnp.arange(L)
    mask = (idx[None, :] >= starts[:, None]) & (idx[None, :] < ends[:, None])
    w = mask.astype(x.dtype) / (ends - starts).astype(x.dtype)[:, None]  # (out, L)
    return x @ w.T


def init_causal_attention_params(key, in_dim, out_dim, num_heads):
    D = in_dim if in_dim > out_dim else out_dim  # qkv output feature dim per q/k/v
    k1, k2, k3, k4, k5 = jax.random.split(key, 5)
    return {
        # stored pre-transposed so the kernel computes x @ W (+ bias)
        "w_qkv": jax.random.normal(k1, (in_dim, 3 * D), jnp.float32) * 0.02,
        "q_bias": jax.random.normal(k2, (D,), jnp.float32) * 0.02,
        "v_bias": jax.random.normal(k3, (D,), jnp.float32) * 0.02,
        "w_proj": jax.random.normal(k4, (out_dim, out_dim), jnp.float32) * 0.02,
        "b_proj": jax.random.normal(k5, (out_dim,), jnp.float32) * 0.02,
    }


def causal_attention_forward(x, params, *, in_dim, out_dim, num_heads):
    B, N, C = x.shape
    D = in_dim if in_dim > out_dim else out_dim
    head_dim = D // num_heads
    scale = 1.0 / math.sqrt(head_dim)  # SDPA default scale

    # qkv projection (tiled Pallas matmul), bias = cat(q_bias, 0, v_bias).
    # bf16 output: attention consumes bf16, so f32 writeback + cast passes are wasted.
    bias = jnp.concatenate(
        [params["q_bias"], jnp.zeros((D,), jnp.float32), params["v_bias"]]
    )
    qkv = pallas_linear(x.reshape(B * N, C), params["w_qkv"], bias,
                        out_dtype=jnp.bfloat16)            # (B*N, 3D) bf16
    qkv = qkv.reshape(B, N, 3 * D)                          # free reshape, no transpose

    # flash-style causal attention; output is (B, N, H*hd) bf16 already in the
    # torch transpose(1,2).reshape(B, N, -1) layout -> no XLA transpose afterwards.
    attn = pallas_causal_attention(qkv, D=D, num_heads=num_heads, scale=scale)

    if in_dim > out_dim:
        y = attn.astype(jnp.float32).reshape(B, N, num_heads, head_dim).mean(axis=2)
        if in_dim // num_heads != out_dim:
            y = adaptive_avg_pool1d(y, out_dim)
    else:
        y = attn  # already (B, N, num_heads * head_dim)

    # output projection (tiled Pallas matmul), f32 output to match the reference dtype
    out = pallas_linear(y.reshape(B * N, out_dim), params["w_proj"], params["b_proj"],
                        out_dtype=jnp.float32)
    return out.reshape(B, N, out_dim)


# ----------------------------------------------------------------------------- #
# Pure-JAX f32 reference (sanity check)
# ----------------------------------------------------------------------------- #
def causal_attention_reference(x, params, *, in_dim, out_dim, num_heads):
    B, N, C = x.shape
    D = in_dim if in_dim > out_dim else out_dim
    head_dim = D // num_heads
    scale = 1.0 / math.sqrt(head_dim)
    bias = jnp.concatenate(
        [params["q_bias"], jnp.zeros((D,), jnp.float32), params["v_bias"]]
    )
    qkv = x.reshape(B * N, C) @ params["w_qkv"] + bias
    qkv = qkv.reshape(B, N, 3, num_heads, head_dim).transpose(2, 0, 3, 1, 4)
    q, k, v = qkv[0], qkv[1], qkv[2]
    s = jnp.einsum("bhqd,bhkd->bhqk", q, k) * scale
    mask = jnp.tril(jnp.ones((N, N), bool))
    s = jnp.where(mask, s, -jnp.inf)
    p = jax.nn.softmax(s, axis=-1)
    attn = jnp.einsum("bhqk,bhkd->bhqd", p, v)
    if in_dim > out_dim:
        y = jnp.mean(attn, axis=1)
        if in_dim // num_heads != out_dim:
            y = adaptive_avg_pool1d(y, out_dim)
    else:
        y = attn.transpose(0, 2, 1, 3).reshape(B, N, num_heads * head_dim)
    out = y.reshape(B * N, out_dim) @ params["w_proj"] + params["b_proj"]
    return out.reshape(B, N, out_dim)


# ----------------------------------------------------------------------------- #
if __name__ == "__main__":
    key = jax.random.PRNGKey(0)

    # (B, N, in_dim, out_dim, num_heads): small case, pooling branch, tiled/fused case
    configs = [
        (2, 8, 32, 32, 4),      # in_dim <= out_dim branch (single-block tiles, G=H fallback)
        (2, 8, 64, 8, 4),       # in_dim > out_dim branch with adaptive pooling
        (2, 256, 256, 256, 4),  # fused qkv path, 2-head 128-lane blocks, causal block skip
    ]

    for B, N, in_dim, out_dim, num_heads in configs:
        key, kx, kp = jax.random.split(key, 3)
        x = jax.random.normal(kx, (B, N, in_dim), jnp.float32)
        params = init_causal_attention_params(kp, in_dim, out_dim, num_heads)

        out = causal_attention_forward(
            x, params, in_dim=in_dim, out_dim=out_dim, num_heads=num_heads
        )
        out = jax.block_until_ready(out)

        ref = causal_attention_reference(
            x, params, in_dim=in_dim, out_dim=out_dim, num_heads=num_heads
        )
        assert out.shape == (B, N, out_dim)
        # bf16 MXU inputs / bf16 intermediate buffers (f32 accumulation) -> loose tolerance
        assert bool(jnp.allclose(out, ref, rtol=2e-2, atol=2e-2)), (
            f"mismatch vs reference for config {(B, N, in_dim, out_dim, num_heads)}"
        )

    print("KERNEL_OK")
</pallas_src>

<mosaic_0001>
module attributes {stable_mosaic.version = 11 : i64} {
  func.func @_linear_kernel_single(%arg0: i32, %arg1: i32, %arg2: memref<16x32xbf16, #tpu.memory_space<vmem>>, %arg3: memref<32x96xbf16, #tpu.memory_space<vmem>>, %arg4: memref<1x96xf32, #tpu.memory_space<vmem>>, %arg5: memref<16x96xbf16, #tpu.memory_space<vmem>>) attributes {dimension_semantics = [#tpu.dimension_semantics<parallel>, #tpu.dimension_semantics<parallel>], iteration_bounds = array<i64: 1, 1>, scalar_prefetch = 0 : i64, scratch_operands = 0 : i64, tpu.core_type = #tpu.core_type<tc>, window_params = [{transform_indices = @transform_0, window_bounds = array<i64: 16, 32>}, {transform_indices = @transform_1, window_bounds = array<i64: 32, 96>}, {transform_indices = @transform_2, window_bounds = array<i64: 1, 96>}, {transform_indices = @transform_3, window_bounds = array<i64: 16, 96>}]} {
    %c0 = arith.constant 0 : index
    %c0_0 = arith.constant 0 : index
    %0 = vector.load %arg2[%c0, %c0_0] : memref<16x32xbf16, #tpu.memory_space<vmem>>, vector<16x32xbf16>
    %c0_1 = arith.constant 0 : index
    %c0_2 = arith.constant 0 : index
    %1 = vector.load %arg3[%c0_1, %c0_2] : memref<32x96xbf16, #tpu.memory_space<vmem>>, vector<32x96xbf16>
    %cst = arith.constant dense<0.000000e+00> : vector<16x96xf32>
    %2 = tpu.matmul %0, %1, %cst {dimension_numbers = #tpu.dot_dimension_numbers<[1], [0], [0], [1], [0, 0, 1, 1], [], []>} : vector<16x32xbf16>, vector<32x96xbf16>, vector<16x96xf32> -> vector<16x96xf32>
    %c0_3 = arith.constant 0 : index
    %c0_4 = arith.constant 0 : index
    %3 = vector.load %arg4[%c0_3, %c0_4] : memref<1x96xf32, #tpu.memory_space<vmem>>, vector<1x96xf32>
    %4 = vector.broadcast %3 : vector<1x96xf32> to vector<16x96xf32>
    %5 = arith.addf %2, %4 : vector<16x96xf32>
    %6 = arith.truncf %5 : vector<16x96xf32> to vector<16x96xbf16>
    %c0_5 = arith.constant 0 : index
    %c0_6 = arith.constant 0 : index
    %7 = vector.load %arg5[%c0_5, %c0_6] : memref<16x96xbf16, #tpu.memory_space<vmem>>, vector<16x96xbf16>
    tpu.vector_store %arg5[%c0_5, %c0_6], %6 {strides = array<i32>} : memref<16x96xbf16, #tpu.memory_space<vmem>>, vector<16x96xbf16>,
    return
  }
  func.func @transform_0(%arg0: i32, %arg1: i32) -> (i32, i32) {
    %c0_i32 = arith.constant 0 : i32
    %c0_i32_0 = arith.constant 0 : i32
    return %arg0, %c0_i32 : i32, i32
  }
  func.func @transform_1(%arg0: i32, %arg1: i32) -> (i32, i32) {
    %c0_i32 = arith.constant 0 : i32
    %c0_i32_0 = arith.constant 0 : i32
    return %c0_i32, %arg1 : i32, i32
  }
  func.func @transform_2(%arg0: i32, %arg1: i32) -> (i32, i32) {
    %c0_i32 = arith.constant 0 : i32
    %c0_i32_0 = arith.constant 0 : i32
    return %c0_i32, %arg1 : i32, i32
  }
  func.func @transform_3(%arg0: i32, %arg1: i32) -> (i32, i32) {
    %c0_i32 = arith.constant 0 : i32
    return %arg0, %arg1 : i32, i32
  }
}

</mosaic_0001>

<bundles_post_ra>
// kernel: tpu_custom_call.1
= control target key start
LH: loop header
LB: loop body
LE: loop exit
PB: predicated region body
PF: predicated region fallthrough
CT: control target
= control target key end

     0   :  { %8 = vsyncpa [#allocation3], 0  ;;  %s264_s0 = inlined_call_operand.hbm [shape: bf16[16,32], index: 0, kind: input, shape index: {}]   ;;  %s265_s1 = inlined_call_operand.hbm [shape: bf16[32,96], index: 1, kind: input, shape index: {}]   ;;  %s266_s2 = inlined_call_operand.vmem [shape: f32[1,96], index: 2, kind: input, shape index: {}]   ;;  %s267_s3 = inlined_call_operand.hbm [shape: bf16[16,96], index: 3, kind: output, shape index: {}]  }
   0x1   :  { %9 = vsyncpa [#allocation6], 0 }
   0x2   :  { %10 = vsyncpa [#allocation4], 0  ;;  %s15_s14 = sshll.u32 %s264_s0, 4  ;;  %s218_s15 = smov [#allocation2]   ;;  %s16_s14 = int_to_ptr.hbm [resolvable:$true] %s15_s14 }
   0x3   :  { %s17_s16 = sshll.u32 %s218_s15, 4  ;;  %s28_s19 = sshll.u32 %s265_s1, 4  ;;  %s18_s16 = int_to_ptr.vmem [resolvable:$true] %s17_s16  ;;  %s29_s19 = int_to_ptr.hbm [resolvable:$true] %s28_s19 }
   0x4   :  { %s219_s20 = smov 64   ;;  %s220_s21 = smov 4  }
   0x5   :  { %23 = dma.hbm_to_vmem [thread:$0]  %s16_s14, 128, %s18_s16, [#allocation3], %s219_s20, %s219_s20, %s220_s21  }
   0x6   :  { %s221_s22 = smov [#allocation5]  }
   0x7   :  { %s30_s23 = sshll.u32 %s221_s22, 4  ;;  %s31_s23 = int_to_ptr.vmem [resolvable:$true] %s30_s23 }
   0x8   :  { %36 = dma.hbm_to_vmem [thread:$0]  %s29_s19, 256, %s31_s23, [#allocation6], %s219_s20, %s219_s20, %s220_s21  }
   0x9   :  { %212 = dma.done.wait [#allocation3], 128  }
   0xa   :  { %213 = vsyncadd [#allocation3], 4294967168 }
   0xb   :  { %214 = dma.done.wait [#allocation6], 256  }
   0xc   :  { %215 = vsyncadd [#allocation6], 4294967040  ;;  %v133_v0 = vld [vmem:[#allocation5 + $0x8] sm:$0xff]  ;;  %v132_v1 = vld [vmem:[#allocation5] sm:$0xff]  ;;  %vm75_vm0 = vcmask 261120   ;;  %vm95_vm1 = vcmask 781312  }
   0xd   :  { %85 = vmatpush.bf16.msra.mxu0 %v133_v0  ;;  %v131_v2 = vld [vmem:[#allocation2] sm:$0xff]  ;;  %s222_s24 = smov [#allocation7]   ;;  %s104_s28 = sshll.u32 %s267_s3, 4  ;;  %s105_s28 = int_to_ptr.hbm [resolvable:$true] %s104_s28 }
   0xe   :  { %v139_v3 = vld [vmem:[%s266_s2] ss:$0 sm:$0xff]  ;;  %s102_s25 = sshll.u32 %s222_s24, 4  ;;  %s103_s25 = int_to_ptr.vmem [resolvable:$true] %s102_s25 }
  0x11   :  { %86 = vmatpush.bf16.msra.mxu0 %v132_v1 }
  0x14   :  { %130 = vmatmul.msk.bf16.vlgmr.msra.gmra.mxu0 %vm75_vm0, %v131_v2 }
  0x91   :  { %v88_v4 = vpop.f32.mrf.mxu0 }
  0x92   :  { %v89_v5 = vadd.f32 %v139_v3, %v88_v4 }
  0x94   :  { %v93_v6 = vpack.c.bf16 %v89_v5, %v89_v5 }
  0x96   :  { %96 = vst.msk [vmem:[#allocation7] sm:$0xf] %vm95_vm1, %v93_v6 }
  0x99   :  { %v90_v7 = vpop.f32.mrf.mxu0 }
  0x9a   :  { %v91_v8 = vadd.f32 %v139_v3, %v90_v7 }
  0x9c   :  { %v94_v9 = vpack.c.bf16 %v91_v8, %v91_v8 }
  0x9e   :  { %97 = vst.msk [vmem:[#allocation7 + $0x4] sm:$0xf] %vm95_vm1, %v94_v9 }
  0x9f   :  { %110 = dma.vmem_to_hbm [thread:$0]  %s103_s25, 128, %s105_s28, [#allocation4], %s219_s20, %s219_s20, %s220_s21  }
  0xa0   :  { %216 = dma.done.wait [#allocation4], 128  }
  0xa1   :  { %217 = vsyncadd [#allocation4], 4294967168 }
  0xa2   :  { %115 = vsyncpa [#allocation3], 1 }
  0xa3   :  { %116 = vsyncpa [#allocation6], 1 }
  0xa4   :  { %117 = vsyncpa [#allocation4], 1 }

</bundles_post_ra>
